<compile_context>
chip_gen: v5e
topology: v5e:2x2
jax: 0.10.0
libtpu: 0.0.40
codegen_flags: <defaults>
</compile_context>

<pallas_src>
import functools

import jax
import jax.numpy as jnp
from jax import lax
from jax.experimental import pallas as pl
from jax.experimental.pallas import tpu as pltpu

_LANE = 128
_SUB = 16          # multiple of 16 covers both f32 (8) and bf16 (16) sublane tiling


def _round_up(x, m):
    return (x + m - 1) // m * m


def _device_kind():
    try:
        return jax.devices()[0].device_kind.lower()
    except Exception:
        return ""


def _vmem_capacity_bytes():
    try:
        cap = getattr(pltpu.get_tpu_info(), "vmem_capacity_bytes", None)
        if cap:
            return int(cap)
    except Exception:
        pass
    return 64 * 1024 * 1024     # conservative default (v7x per-TC VMEM size)


# -----------------------------------------------------------------------------
# Kernels
# -----------------------------------------------------------------------------
def _mlp_resident_kernel(*refs, num_hidden, compute_dtype):
    """All weights resident in VMEM; grid = (batch tiles,)."""
    if num_hidden > 0:
        x_ref, w1_ref, b1_ref, wh_ref, wo_ref, o_ref = refs
    else:
        x_ref, w1_ref, b1_ref, wo_ref, o_ref = refs
        wh_ref = None

    # Layer 0: Linear(input_dim -> hidden, bias=True); ReLU on the f32 accumulator.
    h = jnp.dot(x_ref[...].astype(compute_dtype), w1_ref[...],
                preferred_element_type=jnp.float32)
    h = jnp.maximum(h + b1_ref[...], 0.0).astype(compute_dtype)

    # (num_layers - 1) x [Linear(hidden -> hidden, bias=False) + ReLU]
    if num_hidden > 0:
        def layer(i, h):
            a = jnp.dot(h, wh_ref[i], preferred_element_type=jnp.float32)
            return jnp.maximum(a, 0.0).astype(compute_dtype)

        if num_hidden <= 4:
            for i in range(num_hidden):            # short stacks: static unroll
                h = layer(i, h)
        else:                                      # deep stacks: bounded unroll
            h = lax.fori_loop(0, num_hidden, layer, h, unroll=2)

    # Output layer: Linear(hidden -> out_total, bias=False); lane-dense store.
    o_ref[...] = jnp.dot(h, wo_ref[...],
                         preferred_element_type=jnp.float32).astype(o_ref.dtype)


def _mlp_streaming_kernel(*refs, num_hidden, compute_dtype):
    """Hidden weights streamed one layer per grid step; grid = (batch, layer)."""
    if num_hidden > 0:
        x_ref, w1_ref, b1_ref, wh_ref, wo_ref, o_ref, h_ref = refs
    else:
        x_ref, w1_ref, b1_ref, wo_ref, o_ref, h_ref = refs
        wh_ref = None

    l = pl.program_id(1)

    @pl.when(l == 0)
    def _():
        a = jnp.dot(x_ref[...].astype(compute_dtype), w1_ref[...],
                    preferred_element_type=jnp.float32)
        h_ref[...] = jnp.maximum(a + b1_ref[...], 0.0).astype(h_ref.dtype)

    if num_hidden > 0:
        # Hidden layer `l` on this step (wh block for layer l was DMA'd by the grid).
        a = jnp.dot(h_ref[...], wh_ref[0], preferred_element_type=jnp.float32)
        h_ref[...] = jnp.maximum(a, 0.0).astype(h_ref.dtype)

    @pl.when(l == pl.num_programs(1) - 1)
    def _():
        o_ref[...] = jnp.dot(h_ref[...], wo_ref[...],
                             preferred_element_type=jnp.float32).astype(o_ref.dtype)


# -----------------------------------------------------------------------------
# Wrapper
# -----------------------------------------------------------------------------
def prepare_params(params, *, compute_dtype=jnp.bfloat16):
    """Pad/cast the weight stack ONCE (hoisted out of the per-call path).

    params = (w1, b1, wh, wo), stored (in_features, out_features), i.e. the
    transpose of PyTorch Linear.weight:
        w1: (input_dim, hidden_dim)    b1: (hidden_dim,) or (1, hidden_dim)
        wh: (num_layers - 1, hidden_dim, hidden_dim)
        wo: (hidden_dim, out_total), out_total = output_dim (*2 if predict_var)
    Hidden/output feature axes are zero-padded to multiples of 128
    (mathematically inert through ReLU); the first layer's K axis stays
    un-padded so `state` never needs a feature-dim copy.
    """
    w1, b1, wh, wo = params
    input_dim, hidden_dim = int(w1.shape[0]), int(w1.shape[1])
    num_hidden = int(wh.shape[0])
    out_total = int(wo.shape[1])
    cdt = jnp.dtype(compute_dtype)

    h_pad = _round_up(hidden_dim, _LANE)
    o_pad = _round_up(out_total, _LANE)

    w1p = jnp.zeros((input_dim, h_pad), cdt).at[:, :hidden_dim].set(w1.astype(cdt))
    b1p = jnp.zeros((1, h_pad), jnp.float32).at[:, :hidden_dim].set(
        jnp.reshape(b1, (1, hidden_dim)).astype(jnp.float32))
    whp = None
    if num_hidden > 0:
        whp = jnp.zeros((num_hidden, h_pad, h_pad), cdt).at[
            :, :hidden_dim, :hidden_dim].set(wh.astype(cdt))
    wop = jnp.zeros((h_pad, o_pad), cdt).at[:hidden_dim, :out_total].set(
        wo.astype(cdt))

    return dict(w1=w1p, b1=b1p, wh=whp, wo=wop, compute_dtype=cdt,
                input_dim=input_dim, hidden_dim=hidden_dim,
                num_hidden=num_hidden, out_total=out_total,
                h_pad=h_pad, o_pad=o_pad)


def _pick_batch_tile(B, *, batch_tile, split_across_cores):
    if batch_tile is not None:
        tb = _round_up(int(batch_tile), _SUB)
        return tb, _round_up(max(B, tb), tb)
    b_pad = _round_up(B, _SUB)
    if split_across_cores and b_pad >= 2 * _SUB:
        # v7x: >= 2 grid steps so the "parallel" axis shards across both TCs.
        tb = min(512, _round_up((b_pad + 1) // 2, _SUB))
    else:
        # Single-TC chips (v5e/v6e): the grid is a serial loop -> one step
        # unless the batch is large enough that streamed x/out tiles matter.
        tb = min(512, b_pad)
    return tb, _round_up(b_pad, tb)


def connected_flow_forward(state, prepared, *, output_dim, predict_var=False,
                           batch_tile=None, weight_streaming=None):
    """ConnectedFlowModel.forward: MLP(state) -> delta (and var if predict_var)."""
    w1p, b1p, whp, wop = prepared["w1"], prepared["b1"], prepared["wh"], prepared["wo"]
    cdt = prepared["compute_dtype"]
    input_dim = prepared["input_dim"]
    num_hidden = prepared["num_hidden"]
    out_total = prepared["out_total"]
    h_pad, o_pad = prepared["h_pad"], prepared["o_pad"]

    B, in_d = state.shape
    assert in_d == input_dim, (in_d, input_dim)
    assert out_total == (2 * output_dim if predict_var else output_dim)

    # ---------------- generation-aware policy ----------------
    is_v7x = "v7" in _device_kind()
    vmem_ceiling = int(0.85 * _vmem_capacity_bytes())  # ~108 MiB v5e/v6e, ~54 MiB v7x

    tb, b_pad = _pick_batch_tile(B, batch_tile=batch_tile,
                                 split_across_cores=is_v7x)
    nb = b_pad // tb

    x_item = jnp.dtype(state.dtype).itemsize
    stream_bytes = 2 * (tb * input_dim * x_item + tb * o_pad * 4)  # dbl-buffered x/out
    act_bytes = 4 * tb * h_pad * 4                                  # live activations
    small_weight_bytes = w1p.nbytes + b1p.nbytes + wop.nbytes
    hidden_bytes = whp.nbytes if whp is not None else 0
    margin = 4 << 20

    if weight_streaming is None:
        weight_streaming = (
            num_hidden > 1
            and small_weight_bytes + hidden_bytes + stream_bytes + act_bytes + margin
            > vmem_ceiling)

    # Pad batch rows only (feature dim stays un-padded; common case: no copy).
    xp = state if b_pad == B else (
        jnp.zeros((b_pad, input_dim), state.dtype).at[:B].set(state))

    resident = pl.Buffered(1)   # constant index_map -> one resident VMEM copy
    ops = [xp, w1p, b1p]

    if not weight_streaming:
        kernel = functools.partial(_mlp_resident_kernel,
                                   num_hidden=num_hidden, compute_dtype=cdt)
        grid = (nb,)
        in_specs = [
            pl.BlockSpec((tb, input_dim), lambda b: (b, 0)),
            pl.BlockSpec((input_dim, h_pad), lambda b: (0, 0), pipeline_mode=resident),
            pl.BlockSpec((1, h_pad), lambda b: (0, 0), pipeline_mode=resident),
        ]
        if num_hidden > 0:
            in_specs.append(pl.BlockSpec((num_hidden, h_pad, h_pad),
                                         lambda b: (0, 0, 0),
                                         pipeline_mode=resident))
            ops.append(whp)
        in_specs.append(pl.BlockSpec((h_pad, o_pad), lambda b: (0, 0),
                                     pipeline_mode=resident))
        ops.append(wop)
        out_specs = pl.BlockSpec((tb, o_pad), lambda b: (b, 0))
        scratch_shapes = []
        semantics = ("parallel",)
        vmem_need = small_weight_bytes + hidden_bytes + stream_bytes + act_bytes
    else:
        kernel = functools.partial(_mlp_streaming_kernel,
                                   num_hidden=num_hidden, compute_dtype=cdt)
        n_layer_steps = max(num_hidden, 1)
        grid = (nb, n_layer_steps)
        in_specs = [
            pl.BlockSpec((tb, input_dim), lambda b, l: (b, 0)),
            pl.BlockSpec((input_dim, h_pad), lambda b, l: (0, 0),
                         pipeline_mode=resident),
            pl.BlockSpec((1, h_pad), lambda b, l: (0, 0), pipeline_mode=resident),
        ]
        if num_hidden > 0:
            # Streamed one layer per step; default double-buffering overlaps the
            # HBM fetch of layer l+1 with the MXU work of layer l.
            in_specs.append(pl.BlockSpec((1, h_pad, h_pad), lambda b, l: (l, 0, 0)))
            ops.append(whp)
        in_specs.append(pl.BlockSpec((h_pad, o_pad), lambda b, l: (0, 0),
                                     pipeline_mode=resident))
        ops.append(wop)
        out_specs = pl.BlockSpec((tb, o_pad), lambda b, l: (b, 0))
        scratch_shapes = [pltpu.VMEM((tb, h_pad), cdt)]   # persistent activation
        semantics = ("parallel", "arbitrary")
        vmem_need = (small_weight_bytes + 2 * h_pad * h_pad * cdt.itemsize
                     + stream_bytes + act_bytes + tb * h_pad * cdt.itemsize)

    vmem_limit = int(min(vmem_ceiling,
                         max(32 << 20, int(1.3 * vmem_need) + margin)))

    out = pl.pallas_call(
        kernel,
        out_shape=jax.ShapeDtypeStruct((b_pad, o_pad), jnp.float32),
        grid_spec=pltpu.PrefetchScalarGridSpec(
            num_scalar_prefetch=0,
            grid=grid,
            in_specs=in_specs,
            out_specs=out_specs,
            scratch_shapes=scratch_shapes),
        compiler_params=pltpu.CompilerParams(
            dimension_semantics=semantics,
            vmem_limit_bytes=vmem_limit),
    )(*ops)

    delta = out[:B, :output_dim]
    if predict_var:
        return delta, out[:B, output_dim:out_total]
    return delta


# -----------------------------------------------------------------------------
# Reference / test harness
# -----------------------------------------------------------------------------
def init_params(key, input_dim, output_dim, hidden_dim, num_layers,
                predict_var=False):
    """Deterministic synthetic parameters matching MLP.__init__ shapes."""
    out_total = output_dim * 2 if predict_var else output_dim
    k1, k2, k3, k4 = jax.random.split(key, 4)
    w1 = jax.random.normal(k1, (input_dim, hidden_dim), jnp.float32) * 0.1
    b1 = jax.random.normal(k2, (hidden_dim,), jnp.float32) * 0.1
    wh = jax.random.normal(
        k3, (num_layers - 1, hidden_dim, hidden_dim), jnp.float32) * 0.1
    wo = jax.random.normal(k4, (hidden_dim, out_total), jnp.float32) * 0.1
    return w1, b1, wh, wo


def reference_forward(state, params, *, output_dim, predict_var=False):
    """Pure-JAX reference mirroring the PyTorch forward (true f32 matmuls)."""
    w1, b1, wh, wo = params
    hi = jax.lax.Precision.HIGHEST
    h = jnp.maximum(jnp.dot(state, w1, precision=hi) + b1, 0.0)
    for i in range(wh.shape[0]):
        h = jnp.maximum(jnp.dot(h, wh[i], precision=hi), 0.0)
    out = jnp.dot(h, wo, precision=hi)
    delta = out[:, :output_dim]
    if predict_var:
        return delta, out[:, output_dim:]
    return delta


if __name__ == "__main__":
    key = jax.random.PRNGKey(0)
    k1, k2, k3, k_state = jax.random.split(key, 4)

    batch, input_dim, hidden_dim, output_dim = 64, 32, 32, 16
    state = jax.random.normal(k_state, (batch, input_dim), jnp.float32)

    # 1) f32 compute, num_layers=3, predict_var=False (resident, static unroll).
    params1 = init_params(k1, input_dim, output_dim, hidden_dim,
                          num_layers=3, predict_var=False)
    prep1 = prepare_params(params1, compute_dtype=jnp.float32)
    delta1 = jax.block_until_ready(
        connected_flow_forward(state, prep1, output_dim=output_dim))
    ref1 = reference_forward(state, params1, output_dim=output_dim)
    assert delta1.shape == (batch, output_dim)
    assert jnp.allclose(delta1, ref1, atol=2e-2, rtol=2e-2), float(
        jnp.max(jnp.abs(delta1 - ref1)))

    # 2) bf16 (default) compute, num_layers=8, predict_var=True
    #    (resident weights, fori_loop(unroll=2) over the hidden stack).
    params2 = init_params(k2, input_dim, output_dim, hidden_dim,
                          num_layers=8, predict_var=True)
    prep2 = prepare_params(params2)     # bf16 default, padded once, reused below
    delta2, var2 = connected_flow_forward(state, prep2, output_dim=output_dim,
                                          predict_var=True)
    jax.block_until_ready((delta2, var2))
    ref_d2, ref_v2 = reference_forward(state, params2, output_dim=output_dim,
                                       predict_var=True)
    assert delta2.shape == (batch, output_dim) and var2.shape == (batch, output_dim)
    assert jnp.allclose(delta2, ref_d2, atol=5e-2, rtol=5e-2)
    assert jnp.allclose(var2, ref_v2, atol=5e-2, rtol=5e-2)

    # 3) Same prepared params, forced per-layer weight streaming (v7x fallback).
    delta3, var3 = connected_flow_forward(state, prep2, output_dim=output_dim,
                                          predict_var=True, weight_streaming=True)
    jax.block_until_ready((delta3, var3))
    assert jnp.allclose(delta3, ref_d2, atol=5e-2, rtol=5e-2)
    assert jnp.allclose(var3, ref_v2, atol=5e-2, rtol=5e-2)

    # 4) num_layers=1: no hidden-hidden weights at all (operand is dropped).
    params4 = init_params(k3, input_dim, output_dim, hidden_dim,
                          num_layers=1, predict_var=False)
    prep4 = prepare_params(params4)
    delta4 = jax.block_until_ready(
        connected_flow_forward(state, prep4, output_dim=output_dim))
    ref4 = reference_forward(state, params4, output_dim=output_dim)
    assert delta4.shape == (batch, output_dim)
    assert jnp.allclose(delta4, ref4, atol=5e-2, rtol=5e-2)

    print("KERNEL_OK")
</pallas_src>

<mosaic_0001>
module attributes {stable_mosaic.version = 11 : i64} {
  func.func @_mlp_resident_kernel(%arg0: i32, %arg1: memref<64x32xf32, #tpu.memory_space<vmem>>, %arg2: memref<32x128xf32, #tpu.memory_space<vmem>>, %arg3: memref<1x128xf32, #tpu.memory_space<vmem>>, %arg4: memref<2x128x128xf32, #tpu.memory_space<vmem>>, %arg5: memref<128x128xf32, #tpu.memory_space<vmem>>, %arg6: memref<64x128xf32, #tpu.memory_space<vmem>>) attributes {dimension_semantics = [#tpu.dimension_semantics<parallel>], iteration_bounds = array<i64: 1>, scalar_prefetch = 0 : i64, scratch_operands = 0 : i64, tpu.core_type = #tpu.core_type<tc>, window_params = [{transform_indices = @transform_0, window_bounds = array<i64: 64, 32>}, {pipeline_mode = #tpu.pipeline_mode<synchronous>, transform_indices = @transform_1, window_bounds = array<i64: 32, 128>}, {pipeline_mode = #tpu.pipeline_mode<synchronous>, transform_indices = @transform_2, window_bounds = array<i64: 1, 128>}, {pipeline_mode = #tpu.pipeline_mode<synchronous>, transform_indices = @transform_3, window_bounds = array<i64: 2, 128, 128>}, {pipeline_mode = #tpu.pipeline_mode<synchronous>, transform_indices = @transform_4, window_bounds = array<i64: 128, 128>}, {transform_indices = @transform_5, window_bounds = array<i64: 64, 128>}]} {
    %c0 = arith.constant 0 : index
    %c0_0 = arith.constant 0 : index
    %0 = vector.load %arg1[%c0, %c0_0] : memref<64x32xf32, #tpu.memory_space<vmem>>, vector<64x32xf32>
    %c0_1 = arith.constant 0 : index
    %c0_2 = arith.constant 0 : index
    %1 = vector.load %arg2[%c0_1, %c0_2] : memref<32x128xf32, #tpu.memory_space<vmem>>, vector<32x128xf32>
    %cst = arith.constant dense<0.000000e+00> : vector<64x128xf32>
    %2 = tpu.matmul %0, %1, %cst {dimension_numbers = #tpu.dot_dimension_numbers<[1], [0], [0], [1], [0, 0, 1, 1], [], []>} : vector<64x32xf32>, vector<32x128xf32>, vector<64x128xf32> -> vector<64x128xf32>
    %c0_3 = arith.constant 0 : index
    %c0_4 = arith.constant 0 : index
    %3 = vector.load %arg3[%c0_3, %c0_4] : memref<1x128xf32, #tpu.memory_space<vmem>>, vector<1x128xf32>
    %4 = vector.broadcast %3 : vector<1x128xf32> to vector<64x128xf32>
    %5 = arith.addf %2, %4 : vector<64x128xf32>
    %cst_5 = arith.constant 0.000000e+00 : f32
    %6 = vector.broadcast %cst_5 : f32 to vector<64x128xf32>
    %7 = arith.maximumf %5, %6 : vector<64x128xf32>
    %c0_6 = arith.constant 0 : index
    %c0_7 = arith.constant 0 : index
    %c0_8 = arith.constant 0 : index
    %8 = vector.load %arg4[%c0_6, %c0_7, %c0_8] : memref<2x128x128xf32, #tpu.memory_space<vmem>>, vector<1x128x128xf32>
    %9 = vector.shape_cast %8 : vector<1x128x128xf32> to vector<128x128xf32>
    %cst_9 = arith.constant dense<0.000000e+00> : vector<64x128xf32>
    %10 = tpu.matmul %7, %9, %cst_9 {dimension_numbers = #tpu.dot_dimension_numbers<[1], [0], [0], [1], [0, 0, 1, 1], [], []>} : vector<64x128xf32>, vector<128x128xf32>, vector<64x128xf32> -> vector<64x128xf32>
    %cst_10 = arith.constant 0.000000e+00 : f32
    %11 = vector.broadcast %cst_10 : f32 to vector<64x128xf32>
    %12 = arith.maximumf %10, %11 : vector<64x128xf32>
    %c1 = arith.constant 1 : index
    %c0_11 = arith.constant 0 : index
    %c0_12 = arith.constant 0 : index
    %13 = vector.load %arg4[%c1, %c0_11, %c0_12] : memref<2x128x128xf32, #tpu.memory_space<vmem>>, vector<1x128x128xf32>
    %14 = vector.shape_cast %13 : vector<1x128x128xf32> to vector<128x128xf32>
    %cst_13 = arith.constant dense<0.000000e+00> : vector<64x128xf32>
    %15 = tpu.matmul %12, %14, %cst_13 {dimension_numbers = #tpu.dot_dimension_numbers<[1], [0], [0], [1], [0, 0, 1, 1], [], []>} : vector<64x128xf32>, vector<128x128xf32>, vector<64x128xf32> -> vector<64x128xf32>
    %cst_14 = arith.constant 0.000000e+00 : f32
    %16 = vector.broadcast %cst_14 : f32 to vector<64x128xf32>
    %17 = arith.maximumf %15, %16 : vector<64x128xf32>
    %c0_15 = arith.constant 0 : index
    %c0_16 = arith.constant 0 : index
    %18 = vector.load %arg5[%c0_15, %c0_16] : memref<128x128xf32, #tpu.memory_space<vmem>>, vector<128x128xf32>
    %cst_17 = arith.constant dense<0.000000e+00> : vector<64x128xf32>
    %19 = tpu.matmul %17, %18, %cst_17 {dimension_numbers = #tpu.dot_dimension_numbers<[1], [0], [0], [1], [0, 0, 1, 1], [], []>} : vector<64x128xf32>, vector<128x128xf32>, vector<64x128xf32> -> vector<64x128xf32>
    %c0_18 = arith.constant 0 : index
    %c0_19 = arith.constant 0 : index
    %20 = vector.load %arg6[%c0_18, %c0_19] : memref<64x128xf32, #tpu.memory_space<vmem>>, vector<64x128xf32>
    tpu.vector_store %arg6[%c0_18, %c0_19], %19 {strides = array<i32>} : memref<64x128xf32, #tpu.memory_space<vmem>>, vector<64x128xf32>,
    return
  }
  func.func @transform_0(%arg0: i32) -> (i32, i32) {
    %c0_i32 = arith.constant 0 : i32
    %c0_i32_0 = arith.constant 0 : i32
    return %arg0, %c0_i32 : i32, i32
  }
  func.func @transform_1(%arg0: i32) -> (i32, i32) {
    %c0_i32 = arith.constant 0 : i32
    %c0_i32_0 = arith.constant 0 : i32
    %c0_i32_1 = arith.constant 0 : i32
    return %c0_i32, %c0_i32_0 : i32, i32
  }
  func.func @transform_2(%arg0: i32) -> (i32, i32) {
    %c0_i32 = arith.constant 0 : i32
    %c0_i32_0 = arith.constant 0 : i32
    %c0_i32_1 = arith.constant 0 : i32
    return %c0_i32, %c0_i32_0 : i32, i32
  }
  func.func @transform_3(%arg0: i32) -> (i32, i32, i32) {
    %c0_i32 = arith.constant 0 : i32
    %c0_i32_0 = arith.constant 0 : i32
    %c0_i32_1 = arith.constant 0 : i32
    %c0_i32_2 = arith.constant 0 : i32
    return %c0_i32, %c0_i32_0, %c0_i32_1 : i32, i32, i32
  }
  func.func @transform_4(%arg0: i32) -> (i32, i32) {
    %c0_i32 = arith.constant 0 : i32
    %c0_i32_0 = arith.constant 0 : i32
    %c0_i32_1 = arith.constant 0 : i32
    return %c0_i32, %c0_i32_0 : i32, i32
  }
  func.func @transform_5(%arg0: i32) -> (i32, i32) {
    %c0_i32 = arith.constant 0 : i32
    %c0_i32_0 = arith.constant 0 : i32
    return %arg0, %c0_i32 : i32, i32
  }
}

</mosaic_0001>

<bundles_post_ra>
// kernel: tpu_custom_call.1
= control target key start
LH: loop header
LB: loop body
LE: loop exit
PB: predicated region body
PF: predicated region fallthrough
CT: control target
= control target key end

     0   :  { %10 = vsyncpa [#allocation3], 0  ;;  %s551_s0 = inlined_call_operand.vmem [shape: f32[64,32], index: 0, kind: input, shape index: {}]   ;;  %s552_s1 = inlined_call_operand.vmem [shape: f32[32,128], index: 1, kind: input, shape index: {}]   ;;  %s553_s2 = inlined_call_operand.vmem [shape: f32[1,128], index: 2, kind: input, shape index: {}]   ;;  %s554_s3 = inlined_call_operand.hbm [shape: f32[2,128,128], index: 3, kind: input, shape index: {}]   ;;  %s555_s4 = inlined_call_operand.hbm [shape: f32[128,128], index: 4, kind: input, shape index: {}]   ;;  %s556_s5 = inlined_call_operand.hbm [shape: f32[64,128], index: 5, kind: output, shape index: {}]  }
   0x1   :  { %11 = vsyncpa [#allocation6], 0 }
   0x2   :  { %12 = vsyncpa [#allocation4], 0  ;;  %s23_s20 = sshll.u32 %s554_s3, 4  ;;  %s451_s21 = smov [#allocation2]   ;;  %s24_s20 = int_to_ptr.hbm [resolvable:$true] %s23_s20 }
   0x3   :  { %s25_s22 = sshll.u32 %s451_s21, 4  ;;  %s36_s25 = sshll.u32 %s555_s4, 4  ;;  %s26_s22 = int_to_ptr.vmem [resolvable:$true] %s25_s22  ;;  %s37_s25 = int_to_ptr.hbm [resolvable:$true] %s36_s25 }
   0x4   :  { %s452_s26 = smov 128   ;;  %s453_s27 = smov 8  }
   0x5   :  { %31 = dma.hbm_to_vmem [thread:$0]  %s24_s20, 4096, %s26_s22, [#allocation3], %s452_s26, %s452_s26, %s453_s27  }
   0x6   :  { %s454_s28 = smov [#allocation5]  }
   0x7   :  { %s38_s29 = sshll.u32 %s454_s28, 4  ;;  %s39_s29 = int_to_ptr.vmem [resolvable:$true] %s38_s29 }
   0x8   :  { %44 = dma.hbm_to_vmem [thread:$0]  %s37_s25, 2048, %s39_s29, [#allocation6], %s452_s26, %s452_s26, %s453_s27  }
   0x9   :  { %445 = dma.done.wait [#allocation3], 4096  }
   0xa   :  { %446 = vsyncadd [#allocation3], 4294963200 }
   0xb   :  { %447 = dma.done.wait [#allocation6], 2048  }
   0xc   :  { %448 = vsyncadd [#allocation6], 4294965248  ;;  %v64_v0 = vld [vmem:[%s552_s1 + $0x18] sm:$0xff]  ;;  %v63_v1 = vld [vmem:[%s552_s1 + $0x10] sm:$0xff]  ;;  %vm69_vm0 = vcmask 261120   ;;  %s345_s30 = sshll.u32 %s556_s5, 4  ;;  %s346_s30 = int_to_ptr.hbm [resolvable:$true] %s345_s30 }
   0xd   :  { %106 = vmatpush.msra.mxu0 %v64_v0  ;;  %v62_v2 = vld [vmem:[%s552_s1 + $0x8] sm:$0xff]  ;;  %v61_v3 = vld [vmem:[%s552_s1] sm:$0xff]  ;;  %v55_v6 = vld [vmem:[%s551_s0 + $0x10] sm:$0xff] }
   0xe   :  { %v53_v4 = vld [vmem:[%s551_s0] sm:$0xff]  ;;  %v54_v5 = vld [vmem:[%s551_s0 + $0x8] sm:$0xff]  ;;  %v56_v7 = vld [vmem:[%s551_s0 + $0x18] sm:$0xff] }
   0xf   :  { %107 = vmatpush.msra.mxu0 %v63_v1  ;;  %v158_v8 = vld [vmem:[#allocation2 + $0x78] sm:$0xff]  ;;  %v157_v9 = vld [vmem:[#allocation2 + $0x70] sm:$0xff]  ;;  %v156_v10 = vld [vmem:[#allocation2 + $0x68] sm:$0xff] }
  0x10   :  { %159 = vmatpush.msra.mxu1 %v158_v8  ;;  %v155_v11 = vld [vmem:[#allocation2 + $0x60] sm:$0xff]  ;;  %v154_v13 = vld [vmem:[#allocation2 + $0x58] sm:$0xff]  ;;  %v153_v14 = vld [vmem:[#allocation2 + $0x50] sm:$0xff] }
  0x11   :  { %108 = vmatpush.msra.mxu0 %v62_v2  ;;  %v57_v12 = vld [vmem:[%s551_s0 + $0x20] sm:$0xff]  ;;  %v152_v15 = vld [vmem:[#allocation2 + $0x48] sm:$0xff]  ;;  %v150_v18 = vld [vmem:[#allocation2 + $0x38] sm:$0xff] }
  0x12   :  { %160 = vmatpush.msra.mxu1 %v157_v9  ;;  %v151_v16 = vld [vmem:[#allocation2 + $0x40] sm:$0xff]  ;;  %v58_v17 = vld [vmem:[%s551_s0 + $0x28] sm:$0xff]  ;;  %v149_v19 = vld [vmem:[#allocation2 + $0x30] sm:$0xff] }
  0x13   :  { %109 = vmatpush.msra.mxu0 %v61_v3  ;;  %v148_v20 = vld [vmem:[#allocation2 + $0x28] sm:$0xff]  ;;  %v147_v21 = vld [vmem:[#allocation2 + $0x20] sm:$0xff]  ;;  %v59_v22 = vld [vmem:[%s551_s0 + $0x30] sm:$0xff] }
  0x14   :  { %359 = vmatmul.msk.f32.vlgmr.msra.gmra.mxu0 %vm69_vm0, %v53_v4  ;;  %161 = vmatpush.msra.mxu1 %v156_v10  ;;  %v146_v23 = vld [vmem:[#allocation2 + $0x18] sm:$0xff]  ;;  %v145_v25 = vld [vmem:[#allocation2 + $0x10] sm:$0xff]  ;;  %v144_v26 = vld [vmem:[#allocation2 + $0x8] sm:$0xff] }
  0x15   :  { %v60_v24 = vld [vmem:[%s551_s0 + $0x38] sm:$0xff]  ;;  %v143_v27 = vld [vmem:[#allocation2] sm:$0xff]  ;;  %v223_v42 = vld [vmem:[#allocation2 + $0xf0] sm:$0xff]  ;;  %s455_s0 = smov [#allocation7]  }
  0x16   :  { %162 = vmatpush.msra.mxu1 %v155_v11  ;;  %v372_v28 = vld [vmem:[%s553_s2] ss:$0 sm:$0xff]  ;;  %v224_v41 = vld [vmem:[#allocation2 + $0xf8] sm:$0xff]  ;;  %v222_v43 = vld [vmem:[#allocation2 + $0xe8] sm:$0xff]  ;;  %s343_s2 = sshll.u32 %s455_s0, 4  ;;  %s344_s2 = int_to_ptr.vmem [resolvable:$true] %s343_s2 }
  0x17   :  { %225 = vmatpush.msra.mxu2 %v224_v41  ;;  %v221_v46 = vld [vmem:[#allocation2 + $0xe0] sm:$0xff]  ;;  %v220_v48 = vld [vmem:[#allocation2 + $0xd8] sm:$0xff]  ;;  %v219_v49 = vld [vmem:[#allocation2 + $0xd0] sm:$0xff] }
  0x18   :  { %163 = vmatpush.msra.mxu1 %v154_v13  ;;  %v218_v50 = vld [vmem:[#allocation2 + $0xc8] sm:$0xff]  ;;  %v217_v53 = vld [vmem:[#allocation2 + $0xc0] sm:$0xff]  ;;  %v216_v55 = vld [vmem:[#allocation2 + $0xb8] sm:$0xff] }
  0x19   :  { %226 = vmatpush.msra.mxu2 %v223_v42  ;;  %v215_v56 = vld [vmem:[#allocation2 + $0xb0] sm:$0xff]  ;;  %v214_v57 = vld [vmem:[#allocation2 + $0xa8] sm:$0xff]  ;;  %v213_v60 = vld [vmem:[#allocation2 + $0xa0] sm:$0xff] }
  0x1a   :  { %164 = vmatpush.msra.mxu1 %v153_v14  ;;  %v212_v62 = vld [vmem:[#allocation2 + $0x98] sm:$0xff]  ;;  %v211_v63 = vld [vmem:[#allocation2 + $0x90] sm:$0xff]  ;;  %v210_v3 = vld [vmem:[#allocation2 + $0x88] sm:$0xff] }
  0x1b   :  { %227 = vmatpush.msra.mxu2 %v222_v43  ;;  %v209_v4 = vld [vmem:[#allocation2 + $0x80] sm:$0xff]  ;;  %v289_v13 = vld [vmem:[#allocation5 + $0x78] sm:$0xff]  ;;  %v288_v14 = vld [vmem:[#allocation5 + $0x70] sm:$0xff] }
  0x1c   :  { %360 = vmatmul.msk.f32.gmra.mxu0 %vm69_vm0, %v54_v5  ;;  %165 = vmatpush.msra.mxu1 %v152_v15  ;;  %v287_v15 = vld [vmem:[#allocation5 + $0x68] sm:$0xff] }
  0x1d   :  { %228 = vmatpush.msra.mxu2 %v221_v46  ;;  %290 = vmatpush.msra.mxu3 %v289_v13 }
  0x1e   :  { %166 = vmatpush.msra.mxu1 %v151_v16  ;;  %v286_v16 = vld [vmem:[#allocation5 + $0x60] sm:$0xff] }
  0x1f   :  { %229 = vmatpush.msra.mxu2 %v220_v48  ;;  %291 = vmatpush.msra.mxu3 %v288_v14 }
  0x20   :  { %167 = vmatpush.msra.mxu1 %v150_v18 }
  0x21   :  { %230 = vmatpush.msra.mxu2 %v219_v49  ;;  %292 = vmatpush.msra.mxu3 %v287_v15 }
  0x22   :  { %168 = vmatpush.msra.mxu1 %v149_v19  ;;  %v285_v19 = vld [vmem:[#allocation5 + $0x58] sm:$0xff] }
  0x23   :  { %231 = vmatpush.msra.mxu2 %v218_v50  ;;  %293 = vmatpush.msra.mxu3 %v286_v16 }
  0x24   :  { %361 = vmatmul.msk.f32.gmra.mxu0 %vm69_vm0, %v55_v6  ;;  %169 = vmatpush.msra.mxu1 %v148_v20  ;;  %v284_v20 = vld [vmem:[#allocation5 + $0x50] sm:$0xff] }
  0x25   :  { %232 = vmatpush.msra.mxu2 %v217_v53  ;;  %294 = vmatpush.msra.mxu3 %v285_v19 }
  0x26   :  { %170 = vmatpush.msra.mxu1 %v147_v21  ;;  %v283_v21 = vld [vmem:[#allocation5 + $0x48] sm:$0xff] }
  0x27   :  { %233 = vmatpush.msra.mxu2 %v216_v55  ;;  %295 = vmatpush.msra.mxu3 %v284_v20 }
  0x28   :  { %171 = vmatpush.msra.mxu1 %v146_v23 }
  0x29   :  { %234 = vmatpush.msra.mxu2 %v215_v56  ;;  %296 = vmatpush.msra.mxu3 %v283_v21 }
  0x2a   :  { %172 = vmatpush.msra.mxu1 %v145_v25  ;;  %v281_v25 = vld [vmem:[#allocation5 + $0x38] sm:$0xff] }
  0x2b   :  { %235 = vmatpush.msra.mxu2 %v214_v57 }
  0x2c   :  { %362 = vmatmul.msk.f32.gmra.mxu0 %vm69_vm0, %v56_v7  ;;  %173 = vmatpush.msra.mxu1 %v144_v26  ;;  %v280_v26 = vld [vmem:[#allocation5 + $0x30] sm:$0xff] }
  0x2d   :  { %236 = vmatpush.msra.mxu2 %v213_v60 }
  0x2e   :  { %174 = vmatpush.msra.mxu1 %v143_v27  ;;  %v279_v27 = vld [vmem:[#allocation5 + $0x28] sm:$0xff] }
  0x2f   :  { %237 = vmatpush.msra.mxu2 %v212_v62 }
  0x31   :  { %238 = vmatpush.msra.mxu2 %v211_v63 }
  0x33   :  { %239 = vmatpush.msra.mxu2 %v210_v3 }
  0x34   :  { %363 = vmatmul.msk.f32.gmra.mxu0 %vm69_vm0, %v57_v12 }
  0x35   :  { %240 = vmatpush.msra.mxu2 %v209_v4 }
  0x3c   :  { %364 = vmatmul.msk.f32.gmra.mxu0 %vm69_vm0, %v58_v17 }
  0x44   :  { %365 = vmatmul.msk.f32.gmra.mxu0 %vm69_vm0, %v59_v22  ;;  %v282_v22 = vld [vmem:[#allocation5 + $0x40] sm:$0xff] }
  0x45   :  { %297 = vmatpush.msra.mxu3 %v282_v22 }
  0x47   :  { %298 = vmatpush.msra.mxu3 %v281_v25 }
  0x49   :  { %299 = vmatpush.msra.mxu3 %v280_v26 }
  0x4b   :  { %300 = vmatpush.msra.mxu3 %v279_v27 }
  0x4c   :  { %366 = vmatmul.msk.f32.gmra.mxu0 %vm69_vm0, %v60_v24 }
  0x91   :  { %v111_v29 = vpop.f32.mrf.mxu0 }
  0x92   :  { %v112_v30 = vadd.f32 %v372_v28, %v111_v29 }
  0x94   :  { %v135_v31 = vmax.f32 %v112_v30, 0.0 }
  0x96   :  { %175 = vmatmul.f32.vlgmr.msra.gmra.mxu1 %v135_v31  ;;  %v277_v31 = vld [vmem:[#allocation5 + $0x18] sm:$0xff] }
  0x99   :  { %v114_v32 = vpop.f32.mrf.mxu0 }
  0x9a   :  { %v115_v33 = vadd.f32 %v372_v28, %v114_v32  ;;  %v276_v32 = vld [vmem:[#allocation5 + $0x10] sm:$0xff] }
  0x9c   :  { %v136_v34 = vmax.f32 %v115_v33, 0.0 }
  0x9e   :  { %178 = vmatmul.f32.gmra.mxu1 %v136_v34 }
  0xa1   :  { %v117_v35 = vpop.f32.mrf.mxu0 }
  0xa2   :  { %v118_v36 = vadd.f32 %v372_v28, %v117_v35  ;;  %v275_v35 = vld [vmem:[#allocation5 + $0x8] sm:$0xff] }
  0xa4   :  { %v137_v37 = vmax.f32 %v118_v36, 0.0  ;;  %v274_v36 = vld [vmem:[#allocation5] sm:$0xff] }
  0xa6   :  { %181 = vmatmul.f32.gmra.mxu1 %v137_v37 }
  0xa9   :  { %v120_v38 = vpop.f32.mrf.mxu0 }
  0xaa   :  { %v121_v39 = vadd.f32 %v372_v28, %v120_v38 }
  0xac   :  { %v138_v40 = vmax.f32 %v121_v39, 0.0 }
  0xae   :  { %184 = vmatmul.f32.gmra.mxu1 %v138_v40 }
  0xb1   :  { %v123_v44 = vpop.f32.mrf.mxu0 }
  0xb2   :  { %v124_v45 = vadd.f32 %v372_v28, %v123_v44 }
  0xb4   :  { %v139_v47 = vmax.f32 %v124_v45, 0.0 }
  0xb6   :  { %187 = vmatmul.f32.gmra.mxu1 %v139_v47 }
  0xb9   :  { %v126_v51 = vpop.f32.mrf.mxu0 }
  0xba   :  { %v127_v52 = vadd.f32 %v372_v28, %v126_v51 }
  0xbc   :  { %v140_v54 = vmax.f32 %v127_v52, 0.0 }
  0xbe   :  { %190 = vmatmul.f32.gmra.mxu1 %v140_v54 }
  0xc1   :  { %v129_v58 = vpop.f32.mrf.mxu0 }
  0xc2   :  { %v130_v59 = vadd.f32 %v372_v28, %v129_v58 }
  0xc4   :  { %v141_v61 = vmax.f32 %v130_v59, 0.0 }
  0xc6   :  { %193 = vmatmul.f32.gmra.mxu1 %v141_v61 }
  0xc9   :  { %v132_v0 = vpop.f32.mrf.mxu0 }
  0xca   :  { %v133_v1 = vadd.f32 %v372_v28, %v132_v0  ;;  %v278_v28 = vld [vmem:[#allocation5 + $0x20] sm:$0xff] }
  0xcb   :  { %301 = vmatpush.msra.mxu3 %v278_v28 }
  0xcc   :  { %v142_v2 = vmax.f32 %v133_v1, 0.0 }
  0xcd   :  { %302 = vmatpush.msra.mxu3 %v277_v31 }
  0xce   :  { %196 = vmatmul.f32.gmra.mxu1 %v142_v2 }
  0xcf   :  { %303 = vmatpush.msra.mxu3 %v276_v32 }
  0xd1   :  { %304 = vmatpush.msra.mxu3 %v275_v35 }
  0xd3   :  { %305 = vmatpush.msra.mxu3 %v274_v36 }
 0x113   :  { %v176_v5 = vpop.f32.mrf.mxu1 }
 0x114   :  { %v200_v6 = vmax.f32 %v176_v5, 0.0 }
 0x116   :  { %241 = vmatmul.f32.vlgmr.msra.gmra.mxu2 %v200_v6 }
 0x11b   :  { %v179_v7 = vpop.f32.mrf.mxu1 }
 0x11c   :  { %v201_v8 = vmax.f32 %v179_v7, 0.0 }
 0x11e   :  { %244 = vmatmul.f32.gmra.mxu2 %v201_v8 }
 0x123   :  { %v182_v9 = vpop.f32.mrf.mxu1 }
 0x124   :  { %v202_v10 = vmax.f32 %v182_v9, 0.0 }
 0x126   :  { %247 = vmatmul.f32.gmra.mxu2 %v202_v10 }
 0x12b   :  { %v185_v11 = vpop.f32.mrf.mxu1 }
 0x12c   :  { %v203_v12 = vmax.f32 %v185_v11, 0.0 }
 0x12e   :  { %250 = vmatmul.f32.gmra.mxu2 %v203_v12 }
 0x133   :  { %v188_v17 = vpop.f32.mrf.mxu1 }
 0x134   :  { %v204_v18 = vmax.f32 %v188_v17, 0.0 }
 0x136   :  { %253 = vmatmul.f32.gmra.mxu2 %v204_v18 }
 0x13b   :  { %v191_v23 = vpop.f32.mrf.mxu1 }
 0x13c   :  { %v205_v24 = vmax.f32 %v191_v23, 0.0 }
 0x13e   :  { %256 = vmatmul.f32.gmra.mxu2 %v205_v24 }
 0x143   :  { %v194_v29 = vpop.f32.mrf.mxu1 }
 0x144   :  { %v206_v30 = vmax.f32 %v194_v29, 0.0 }
 0x146   :  { %259 = vmatmul.f32.gmra.mxu2 %v206_v30 }
 0x14b   :  { %v197_v33 = vpop.f32.mrf.mxu1 }
 0x14c   :  { %v207_v34 = vmax.f32 %v197_v33, 0.0 }
 0x14e   :  { %262 = vmatmul.f32.gmra.mxu2 %v207_v34 }
 0x199   :  { %v242_v37 = vpop.f32.mrf.mxu2 }
 0x19a   :  { %v266_v38 = vmax.f32 %v242_v37, 0.0 }
 0x19c   :  { %306 = vmatmul.f32.vlgmr.msra.gmra.mxu3 %v266_v38 }
 0x1a1   :  { %v245_v39 = vpop.f32.mrf.mxu2 }
 0x1a2   :  { %v267_v40 = vmax.f32 %v245_v39, 0.0 }
 0x1a4   :  { %309 = vmatmul.f32.gmra.mxu3 %v267_v40 }
 0x1a9   :  { %v248_v41 = vpop.f32.mrf.mxu2 }
 0x1aa   :  { %v268_v42 = vmax.f32 %v248_v41, 0.0 }
 0x1ac   :  { %312 = vmatmul.f32.gmra.mxu3 %v268_v42 }
 0x1b1   :  { %v251_v43 = vpop.f32.mrf.mxu2 }
 0x1b2   :  { %v269_v44 = vmax.f32 %v251_v43, 0.0 }
 0x1b4   :  { %315 = vmatmul.f32.gmra.mxu3 %v269_v44 }
 0x1b9   :  { %v254_v45 = vpop.f32.mrf.mxu2 }
 0x1ba   :  { %v270_v46 = vmax.f32 %v254_v45, 0.0 }
 0x1bc   :  { %318 = vmatmul.f32.gmra.mxu3 %v270_v46 }
 0x1c1   :  { %v257_v47 = vpop.f32.mrf.mxu2 }
 0x1c2   :  { %v271_v48 = vmax.f32 %v257_v47, 0.0 }
 0x1c4   :  { %321 = vmatmul.f32.gmra.mxu3 %v271_v48 }
 0x1c9   :  { %v260_v49 = vpop.f32.mrf.mxu2 }
 0x1ca   :  { %v272_v50 = vmax.f32 %v260_v49, 0.0 }
 0x1cc   :  { %324 = vmatmul.f32.gmra.mxu3 %v272_v50 }
 0x1d1   :  { %v263_v51 = vpop.f32.mrf.mxu2 }
 0x1d2   :  { %v273_v52 = vmax.f32 %v263_v51, 0.0 }
 0x1d4   :  { %327 = vmatmul.f32.gmra.mxu3 %v273_v52 }
 0x21f   :  { %v307_v53 = vpop.f32.mrf.mxu3 }
 0x220   :  { %331 = vst [vmem:[#allocation7] sm:$0xff] %v307_v53 }
 0x227   :  { %v310_v54 = vpop.f32.mrf.mxu3 }
 0x228   :  { %332 = vst [vmem:[#allocation7 + $0x8] sm:$0xff] %v310_v54 }
 0x22f   :  { %v313_v55 = vpop.f32.mrf.mxu3 }
 0x230   :  { %333 = vst [vmem:[#allocation7 + $0x10] sm:$0xff] %v313_v55 }
 0x237   :  { %v316_v56 = vpop.f32.mrf.mxu3 }
 0x238   :  { %334 = vst [vmem:[#allocation7 + $0x18] sm:$0xff] %v316_v56 }
 0x23f   :  { %v319_v57 = vpop.f32.mrf.mxu3 }
 0x240   :  { %335 = vst [vmem:[#allocation7 + $0x20] sm:$0xff] %v319_v57 }
 0x247   :  { %v322_v58 = vpop.f32.mrf.mxu3 }
 0x248   :  { %336 = vst [vmem:[#allocation7 + $0x28] sm:$0xff] %v322_v58 }
 0x24f   :  { %v325_v59 = vpop.f32.mrf.mxu3 }
 0x250   :  { %337 = vst [vmem:[#allocation7 + $0x30] sm:$0xff] %v325_v59 }
 0x257   :  { %v328_v60 = vpop.f32.mrf.mxu3 }
 0x258   :  { %338 = vst [vmem:[#allocation7 + $0x38] sm:$0xff] %v328_v60 }
 0x259   :  { %351 = dma.vmem_to_hbm [thread:$0]  %s344_s2, 1024, %s346_s30, [#allocation4], %s452_s26, %s452_s26, %s453_s27  }
 0x25a   :  { %449 = dma.done.wait [#allocation4], 1024  }
 0x25b   :  { %450 = vsyncadd [#allocation4], 4294966272 }
 0x25c   :  { %356 = vsyncpa [#allocation3], 1 }
 0x25d   :  { %357 = vsyncpa [#allocation6], 1 }
 0x25e   :  { %358 = vsyncpa [#allocation4], 1 }

</bundles_post_ra>
